<compile_context>
chip_gen: v7x
topology: tpu7x:2x2x1
jax: 0.10.0
libtpu: 0.0.40
codegen_flags: <defaults>
</compile_context>

<pallas_src>
import math
from functools import partial

import jax
import jax.numpy as jnp
from jax.experimental import pallas as pl
from jax.experimental.pallas import tpu as pltpu

ETYPES = {'onset': 0, 'consecutive': 1, 'during': 2, 'rest': 3,
          'consecutive_rev': 4, 'during_rev': 5, 'rest_rev': 6}


def _round_up(v, m):
    return ((v + m - 1) // m) * m


# ----------------------------- Pallas kernels ------------------------------

def _fused_neigh_kernel(x_ref, w_ref, b_ref, g_ref):
    """g[:, e*fout_p:(e+1)*fout_p] = x @ (Wn_e^T Wg_e^T) + bn_e Wg_e^T, all etypes in one matmul."""
    g = jnp.dot(x_ref[...], w_ref[...], preferred_element_type=jnp.float32) + b_ref[...]
    g_ref[...] = g.astype(jnp.bfloat16)


def _agg_kernel(x_ref, a_ref, g_ref, inv_ref, wsm_ref, blm_ref, o_ref, *, n_e, nk):
    """One grid step = (row tile i, edge type e, src K-tile k).

    acc += (1/deg_e) * (A_e[rows, kblk] @ g_e[kblk]);  on the last (e, k) step add the shared
    self term x @ Ws_mean + bl_mean and apply the fixed 1/E mean over edge types.
    """
    e = pl.program_id(1)
    k = pl.program_id(2)

    @pl.when(jnp.logical_and(e == 0, k == 0))
    def _():
        o_ref[...] = jnp.zeros_like(o_ref)

    # int8 0/1(count) adjacency tile -> bf16 for the MXU; f32 accumulation.
    part = jnp.dot(a_ref[0].astype(jnp.bfloat16), g_ref[...],
                   preferred_element_type=jnp.float32)
    o_ref[...] += inv_ref[0] * part          # exact f32 1/in_degree post-scale (per dst row)

    @pl.when(jnp.logical_and(e == n_e - 1, k == nk - 1))
    def _():
        # mean over edge types uses the fixed 1/E divisor (matches torch out.mean(dim=0));
        # shared self half + mean bias applied once instead of per etype.
        o_ref[...] = (o_ref[...] * (1.0 / n_e)
                      + jnp.dot(x_ref[...], wsm_ref[...], preferred_element_type=jnp.float32)
                      + blm_ref[...])


# ------------------------------ wrappers ------------------------------------

def build_adj(edge_index, edge_type, n_pad, n_etypes):
    """Per-etype adjacency as int8 edge counts A[e, dst, src] plus exact f32 1/in_degree."""
    src, dst = edge_index[0], edge_index[1]
    cnt = jnp.zeros((n_etypes, n_pad, n_pad), jnp.float32)
    cnt = cnt.at[edge_type, dst, src].add(1.0)
    deg = cnt.sum(axis=2, keepdims=True)
    inv_deg = 1.0 / jnp.maximum(deg, 1.0)                 # [E, n_pad, 1] f32, exact
    # int8 halves the dominant HBM stream; >127 duplicate edges per (etype,dst,src) would overflow.
    return cnt.astype(jnp.int8), inv_deg


def hetero_rel_edge_conv_layer(x, edge_index, edge_type, params, n_etypes, edge_features=None):
    n, fin = x.shape
    fin_p, fout_p, fout = params["fin_p"], params["fout_p"], params["fout"]
    n_e = n_etypes

    # ---- tiling: bounded VMEM (v7x 64 MiB/TC), >=2 row tiles for medium graphs (v7x megacore),
    #      32-row alignment (int8 sublane packing; also covers bf16's 16). ----
    if n <= 64:
        tm = _round_up(n, 32)
    elif n <= 512:
        tm = _round_up((n + 1) // 2, 32)      # two row tiles -> both v7x TensorCores busy
    else:
        tm = 256                              # K-tiled below; VMEM independent of graph size
    n_pad = _round_up(n, tm)
    if n_pad > 2048:
        tk = 2048
        n_pad = _round_up(n_pad, tk)          # 2048 is a multiple of 256, stays tm-aligned
    else:
        tk = n_pad
    nrow, nk = n_pad // tm, n_pad // tk

    x_p = jnp.zeros((n_pad, fin_p), jnp.bfloat16).at[:n, :fin].set(x.astype(jnp.bfloat16))
    a_i8, inv_deg = build_adj(edge_index, edge_type, n_pad, n_e)

    ew = n_e * fout_p

    # ---- Stage 1: fused per-etype neighbour transform, one wide row-tiled matmul ----
    g = pl.pallas_call(
        _fused_neigh_kernel,
        out_shape=jax.ShapeDtypeStruct((n_pad, ew), jnp.bfloat16),
        grid_spec=pltpu.PrefetchScalarGridSpec(
            num_scalar_prefetch=0,
            grid=(nrow,),
            in_specs=[
                pl.BlockSpec((tm, fin_p), lambda i: (i, 0)),   # x row tile
                pl.BlockSpec((fin_p, ew), lambda i: (0, 0)),   # stacked folded weights (resident)
                pl.BlockSpec((1, ew), lambda i: (0, 0)),       # stacked folded bias   (resident)
            ],
            out_specs=pl.BlockSpec((tm, ew), lambda i: (i, 0)),  # lane-dense (E*fout_p wide)
        ),
        compiler_params=pltpu.CompilerParams(
            dimension_semantics=("parallel",),
            vmem_limit_bytes=32 * 1024 * 1024,
        ),
    )(x_p, params["wng_stack"], params["bg_stack"])

    # ---- Stage 2: row/K-tiled aggregate + inv-degree scale + mean over etypes + shared self term ----
    flops = 2 * n_e * n_pad * n_pad * fout_p + 2 * n_pad * fin_p * fout_p
    bytes_accessed = (n_e * n_pad * n_pad                    # int8 A stream (read once)
                      + nrow * n_e * n_pad * fout_p * 2      # g re-streamed per row tile (bf16)
                      + n_pad * fin_p * 2                    # x
                      + n_e * n_pad * 4                      # inv_deg
                      + fin_p * fout_p * 2                   # Ws_mean (resident)
                      + n_pad * fout_p * 4)                  # output

    out = pl.pallas_call(
        partial(_agg_kernel, n_e=n_e, nk=nk),
        out_shape=jax.ShapeDtypeStruct((n_pad, fout_p), jnp.float32),
        grid_spec=pltpu.PrefetchScalarGridSpec(
            num_scalar_prefetch=0,
            grid=(nrow, n_e, nk),
            in_specs=[
                pl.BlockSpec((tm, fin_p), lambda i, e, k: (i, 0)),      # x rows (self term)
                pl.BlockSpec((1, tm, tk), lambda i, e, k: (e, i, k)),   # A_e row/K tile, int8
                pl.BlockSpec((tk, fout_p), lambda i, e, k: (k, e)),     # g_e K tile
                pl.BlockSpec((1, tm, 1), lambda i, e, k: (e, i, 0)),    # 1/in_degree rows (f32)
                pl.BlockSpec((fin_p, fout_p), lambda i, e, k: (0, 0)),  # Ws_mean (resident)
                pl.BlockSpec((1, fout_p), lambda i, e, k: (0, 0)),      # bl_mean (resident)
            ],
            out_specs=pl.BlockSpec((tm, fout_p), lambda i, e, k: (i, 0)),  # resident f32 accumulator
        ),
        compiler_params=pltpu.CompilerParams(
            dimension_semantics=("parallel", "arbitrary", "arbitrary"),
            vmem_limit_bytes=32 * 1024 * 1024,
        ),
        cost_estimate=pl.CostEstimate(flops=flops, transcendentals=0,
                                      bytes_accessed=bytes_accessed),
    )(x_p, a_i8, g, inv_deg, params["ws_mean"], params["bl_mean"])

    return out[:n, :fout]


# ------------------------------ parameters ----------------------------------

def _xavier_uniform(key, shape, gain):
    fan_out, fan_in = shape  # torch Linear weight layout: [out_features, in_features]
    limit = gain * math.sqrt(6.0 / (fan_in + fan_out))
    return jax.random.uniform(key, shape, jnp.float32, -limit, limit)


def init_layer_params(key, fin, fout, n_e):
    gain = math.sqrt(2.0)  # nn.init.calculate_gain('relu')
    fin_p, fout_p = _round_up(fin, 128), _round_up(fout, 128)
    keys = jax.random.split(key, 2 * n_e)
    wn = jnp.stack([_xavier_uniform(keys[2 * i], (fin, fin), gain) for i in range(n_e)])          # [E,fin,fin]
    wl = jnp.stack([_xavier_uniform(keys[2 * i + 1], (fout, 2 * fin), gain) for i in range(n_e)])  # [E,fout,2fin]
    bn = jnp.zeros((n_e, fin), jnp.float32)
    bl = jnp.zeros((n_e, fout), jnp.float32)

    ws = wl[:, :, :fin]   # self half   [E, fout, fin]
    wg = wl[:, :, fin:]   # neigh half  [E, fout, fin]

    # Fold neighbour linear into the neigh half of the concat linear (no nonlinearity between):
    #   g_e = (x @ Wn_e^T + bn_e) @ Wg_e^T = x @ M_e + c_e,  M_e = Wn_e^T Wg_e^T,  c_e = bn_e Wg_e^T
    m = jnp.einsum('eji,ekj->eik', wn, wg)            # [E, fin, fout]  (computed in f32)
    c = jnp.einsum('ej,ekj->ek', bn, wg)              # [E, fout]
    # Shared self half / bias pulled out of the per-etype loop (pre-averaged over etypes):
    ws_mean = jnp.transpose(ws, (0, 2, 1)).mean(axis=0)   # [fin, fout]
    bl_mean = bl.mean(axis=0)                              # [fout]

    def pad2(arr, r, c_):
        z = jnp.zeros(arr.shape[:-2] + (r, c_), arr.dtype)
        return z.at[..., :arr.shape[-2], :arr.shape[-1]].set(arr)

    m_p = pad2(m, fin_p, fout_p)                                                   # [E, fin_p, fout_p]
    wng_stack = jnp.transpose(m_p, (1, 0, 2)).reshape(fin_p, n_e * fout_p).astype(jnp.bfloat16)
    bg_stack = jnp.zeros((n_e, fout_p), jnp.float32).at[:, :fout].set(c).reshape(1, n_e * fout_p)
    ws_mean_p = pad2(ws_mean, fin_p, fout_p).astype(jnp.bfloat16)                  # [fin_p, fout_p]
    bl_mean_p = jnp.zeros((1, fout_p), jnp.float32).at[0, :fout].set(bl_mean)      # [1, fout_p]

    return {
        "wng_stack": wng_stack, "bg_stack": bg_stack,
        "ws_mean": ws_mean_p, "bl_mean": bl_mean_p,
        "fin": fin, "fout": fout, "fin_p": fin_p, "fout_p": fout_p,
        "raw": {"wn": wn, "bn": bn, "wl": wl, "bl": bl},
    }


# ------------------------------ f32 reference --------------------------------

def reference_forward(x, edge_index, edge_type, raw, n_e):
    n = x.shape[0]
    src, dst = edge_index[0], edge_index[1]
    outs = []
    for e in range(n_e):
        w = jnp.where(edge_type == e, 1.0, 0.0)
        a = jnp.zeros((n, n), jnp.float32).at[dst, src].add(w)
        deg = a.sum(axis=1, keepdims=True)
        a = a / jnp.maximum(deg, 1.0)
        h = x @ raw["wn"][e].T + raw["bn"][e]
        agg = a @ h
        cat = jnp.concatenate([x, agg], axis=-1)
        outs.append(cat @ raw["wl"][e].T + raw["bl"][e])
    return jnp.stack(outs).mean(axis=0)


# --------------------------------- main --------------------------------------

if __name__ == "__main__":
    key = jax.random.PRNGKey(0)
    k_x, k_src, k_dst, k_et, k_p = jax.random.split(key, 5)

    n_nodes, in_feats, out_feats = 16, 8, 16
    n_e = len(ETYPES)
    num_edges = 48

    x = jax.random.normal(k_x, (n_nodes, in_feats), jnp.float32)
    src = jax.random.randint(k_src, (num_edges,), 0, n_nodes)
    dst = jax.random.randint(k_dst, (num_edges,), 0, n_nodes)
    edge_index = jnp.stack([src, dst])                       # [2, num_edges]
    edge_type = jax.random.randint(k_et, (num_edges,), 0, n_e)

    params = init_layer_params(k_p, in_feats, out_feats, n_e)

    out = hetero_rel_edge_conv_layer(x, edge_index, edge_type, params, n_e)
    jax.block_until_ready(out)
    assert out.shape == (n_nodes, out_feats) and out.dtype == jnp.float32

    ref = reference_forward(x, edge_index, edge_type, params["raw"], n_e)
    err = float(jnp.max(jnp.abs(out - ref)))
    assert err < 0.1, f"max abs error vs f32 reference too large: {err}"
    print("KERNEL_OK")
</pallas_src>

<mosaic_0001>
module attributes {stable_mosaic.version = 11 : i64} {
  func.func @_fused_neigh_kernel(%arg0: i32, %arg1: memref<32x128xbf16, #tpu.memory_space<vmem>>, %arg2: memref<128x896xbf16, #tpu.memory_space<vmem>>, %arg3: memref<1x896xf32, #tpu.memory_space<vmem>>, %arg4: memref<32x896xbf16, #tpu.memory_space<vmem>>) attributes {dimension_semantics = [#tpu.dimension_semantics<parallel>], iteration_bounds = array<i64: 1>, scalar_prefetch = 0 : i64, scratch_operands = 0 : i64, tpu.core_type = #tpu.core_type<tc>, window_params = [{transform_indices = @transform_0, window_bounds = array<i64: 32, 128>}, {pipeline_mode = #tpu.pipeline_mode<synchronous>, transform_indices = @transform_1, window_bounds = array<i64: 128, 896>}, {pipeline_mode = #tpu.pipeline_mode<synchronous>, transform_indices = @transform_2, window_bounds = array<i64: 1, 896>}, {transform_indices = @transform_3, window_bounds = array<i64: 32, 896>}]} {
    %c0 = arith.constant 0 : index
    %c0_0 = arith.constant 0 : index
    %0 = vector.load %arg1[%c0, %c0_0] : memref<32x128xbf16, #tpu.memory_space<vmem>>, vector<32x128xbf16>
    %c0_1 = arith.constant 0 : index
    %c0_2 = arith.constant 0 : index
    %1 = vector.load %arg2[%c0_1, %c0_2] : memref<128x896xbf16, #tpu.memory_space<vmem>>, vector<128x896xbf16>
    %cst = arith.constant dense<0.000000e+00> : vector<32x896xf32>
    %2 = tpu.matmul %0, %1, %cst {dimension_numbers = #tpu.dot_dimension_numbers<[1], [0], [0], [1], [0, 0, 1, 1], [], []>} : vector<32x128xbf16>, vector<128x896xbf16>, vector<32x896xf32> -> vector<32x896xf32>
    %c0_3 = arith.constant 0 : index
    %c0_4 = arith.constant 0 : index
    %3 = vector.load %arg3[%c0_3, %c0_4] : memref<1x896xf32, #tpu.memory_space<vmem>>, vector<1x896xf32>
    %4 = vector.broadcast %3 : vector<1x896xf32> to vector<32x896xf32>
    %5 = arith.addf %2, %4 : vector<32x896xf32>
    %6 = arith.truncf %5 : vector<32x896xf32> to vector<32x896xbf16>
    %c0_5 = arith.constant 0 : index
    %c0_6 = arith.constant 0 : index
    %7 = vector.load %arg4[%c0_5, %c0_6] : memref<32x896xbf16, #tpu.memory_space<vmem>>, vector<32x896xbf16>
    tpu.vector_store %arg4[%c0_5, %c0_6], %6 {strides = array<i32>} : memref<32x896xbf16, #tpu.memory_space<vmem>>, vector<32x896xbf16>,
    return
  }
  func.func @transform_0(%arg0: i32) -> (i32, i32) {
    %c0_i32 = arith.constant 0 : i32
    %c0_i32_0 = arith.constant 0 : i32
    return %arg0, %c0_i32 : i32, i32
  }
  func.func @transform_1(%arg0: i32) -> (i32, i32) {
    %c0_i32 = arith.constant 0 : i32
    %c0_i32_0 = arith.constant 0 : i32
    %c0_i32_1 = arith.constant 0 : i32
    return %c0_i32, %c0_i32_0 : i32, i32
  }
  func.func @transform_2(%arg0: i32) -> (i32, i32) {
    %c0_i32 = arith.constant 0 : i32
    %c0_i32_0 = arith.constant 0 : i32
    %c0_i32_1 = arith.constant 0 : i32
    return %c0_i32, %c0_i32_0 : i32, i32
  }
  func.func @transform_3(%arg0: i32) -> (i32, i32) {
    %c0_i32 = arith.constant 0 : i32
    %c0_i32_0 = arith.constant 0 : i32
    return %arg0, %c0_i32 : i32, i32
  }
}

</mosaic_0001>

<bundles_post_ra>
// kernel: tpu_custom_call.1
= control target key start
LH: loop header
LB: loop body
LE: loop exit
PB: predicated region body
PF: predicated region fallthrough
CT: control target
= control target key end

     0   :  { %8 = vsyncpa [#allocation3], 0  ;;  %s1155_s0 = inlined_call_operand.hbm [shape: bf16[32,128], index: 0, kind: input, shape index: {}]   ;;  %s1156_s1 = inlined_call_operand.hbm [shape: bf16[128,896], index: 1, kind: input, shape index: {}]   ;;  %s1157_s2 = inlined_call_operand.vmem [shape: f32[1,896], index: 2, kind: input, shape index: {}]   ;;  %s1158_s3 = inlined_call_operand.hbm [shape: bf16[32,896], index: 3, kind: output, shape index: {}]  }
   0x1   :  { %9 = vsyncpa [#allocation6], 0 }
   0x2   :  { %10 = vsyncpa [#allocation4], 0  ;;  %s1061_s12 = smov [#allocation2]   ;;  %s989_s16 = scalar_lea.hbm %s1155_s0, 256 }
   0x3   :  { %s16_s13 = sshll.u32 %s1061_s12, 4  ;;  %p990_p0 = scmp.ne.s32.totalorder %s1155_s0, %s989_s16  ;;  %s17_s13 = int_to_ptr.vmem [resolvable:$true] %s16_s13 }
   0x4   :  { %p993_p1 = scmp.lt.u32.totalorder %s989_s16, %s1155_s0 }
   0x6   :  { %p995_p2 = pnand %p993_p1, %p990_p0 }
   0x8   :  { %998 = shalt.err (!%p995_p2)
}
   0x9   :  { %s999_s21 = scalar_lea.vmem %s17_s13, 256  ;;  %p1004_p4 = scmp.lt.s32.totalorder %s17_s13, %s17_s13 }
   0xa   :  { %p1000_p3 = scmp.ne.s32.totalorder %s17_s13, %s999_s21  ;;  %p1005_p5 = scmp.lt.s32.totalorder %s999_s21, %s999_s21 }
   0xc   :  { %p1006_p6 = por %p1005_p5, %p1004_p4 }
   0xe   :  { %p1007_p7 = pnand %p1006_p6, %p1000_p3 }
  0x10   :  { %1010 = shalt.err (!%p1007_p7)
}
  0x11   :  { %s1062_s22 = smov 64   ;;  %s1063_s23 = smov 4  }
  0x12   :  { %22 = dma.hbm_to_vmem [thread:$0]  %s1155_s0, 256, %s17_s13, [#allocation3], %s1062_s22, %s1062_s22, %s1063_s23  }
  0x13   :  { %s1064_s26 = smov [#allocation5]   ;;  %s1011_s30 = scalar_lea.hbm %s1156_s1, 7168 }
  0x14   :  { %s28_s27 = sshll.u32 %s1064_s26, 4  ;;  %p1012_p8 = scmp.ne.s32.totalorder %s1156_s1, %s1011_s30  ;;  %s29_s27 = int_to_ptr.vmem [resolvable:$true] %s28_s27 }
  0x15   :  { %p1015_p9 = scmp.lt.u32.totalorder %s1011_s30, %s1156_s1 }
  0x17   :  { %p1017_p10 = pnand %p1015_p9, %p1012_p8 }
  0x19   :  { %1020 = shalt.err (!%p1017_p10)
}
  0x1a   :  { %s1021_s8 = scalar_lea.vmem %s29_s27, 7168  ;;  %p1026_p12 = scmp.lt.s32.totalorder %s29_s27, %s29_s27 }
  0x1b   :  { %p1022_p11 = scmp.ne.s32.totalorder %s29_s27, %s1021_s8  ;;  %p1027_p13 = scmp.lt.s32.totalorder %s1021_s8, %s1021_s8 }
  0x1d   :  { %p1028_p0 = por %p1027_p13, %p1026_p12 }
  0x1f   :  { %p1029_p1 = pnand %p1028_p0, %p1022_p11 }
  0x21   :  { %1032 = shalt.err (!%p1029_p1)
}
  0x22   :  { %s1065_s0 = smov 448   ;;  %s1066_s9 = smov 28  }
  0x23   :  { %34 = dma.hbm_to_vmem [thread:$0]  %s1156_s1, 7168, %s29_s27, [#allocation6], %s1065_s0, %s1065_s0, %s1066_s9  }
  0x24   :  { %1055 = dma.done.wait [#allocation3], 256  }
  0x25   :  { %1056 = vsyncadd [#allocation3], 4294967040 }
  0x26   :  { %1057 = dma.done.wait [#allocation6], 7168  }
  0x27   :  { %1058 = vsyncadd [#allocation6], 4294960128  ;;  %v1067_v0 = vmov 0   ;;  %v907_v1 = vld [vmem:[#allocation5 + $0x4] ss:$28 sps:$4 sm:$0xff]   ;;  %v1118_v33 = vld [vmem:[#allocation2] sm:$0xff]   ;;  %v114_v59 = vlaneseq }
  0x28   :  { %481 = vmatprep.mubr.bf16.mxu0 %v1067_v0  ;;  %534 = vmatprep.mubr.bf16.mxu1 %v1067_v0  ;;  %v909_v2 = vld [vmem:[#allocation5] ss:$28 sps:$4 sm:$0xff]   ;;  %v912_v4 = vld [vmem:[#allocation5 + $0x38] ss:$28 sps:$4 sm:$0xff]   ;;  %v913_v5 = vld [vmem:[#allocation5 + $0xc] ss:$28 sps:$4 sm:$0xff]  }
  0x29   :  { %449 = vmatprep.subr.bf16.mxu0 %v907_v1  ;;  %v910_v3 = vld [vmem:[#allocation5 + $0x3c] ss:$28 sps:$4 sm:$0xff]   ;;  %v915_v6 = vld [vmem:[#allocation5 + $0x8] ss:$28 sps:$4 sm:$0xff]   ;;  %v916_v7 = vld [vmem:[#allocation5 + $0x74] ss:$28 sps:$4 sm:$0xff]   ;;  %502 = vmatprep.subr.bf16.mxu1 %v913_v5 }
  0x2a   :  { %450 = vmatpush1.bf16.msra.mxu0 %v909_v2  ;;  %503 = vmatpush1.bf16.msra.mxu1 %v915_v6  ;;  %v919_v8 = vld [vmem:[#allocation5 + $0x44] ss:$28 sps:$4 sm:$0xff]   ;;  %v918_v10 = vld [vmem:[#allocation5 + $0x70] ss:$28 sps:$4 sm:$0xff]   ;;  %v925_v12 = vld [vmem:[#allocation5 + $0x7c] ss:$28 sps:$4 sm:$0xff]  }
  0x2b   :  { %451 = vmatprep.subr.bf16.mxu0 %v910_v3  ;;  %v921_v9 = vld [vmem:[#allocation5 + $0x40] ss:$28 sps:$4 sm:$0xff]   ;;  %v922_v11 = vld [vmem:[#allocation5 + $0xac] ss:$28 sps:$4 sm:$0xff]   ;;  %504 = vmatprep.subr.bf16.mxu1 %v919_v8  ;;  %v927_v13 = vld [vmem:[#allocation5 + $0x78] ss:$28 sps:$4 sm:$0xff]  }
  0x2c   :  { %v924_v14 = vld [vmem:[#allocation5 + $0xa8] ss:$28 sps:$4 sm:$0xff]   ;;  %v931_v15 = vld [vmem:[#allocation5 + $0xb4] ss:$28 sps:$4 sm:$0xff]   ;;  %v930_v18 = vld [vmem:[#allocation5 + $0xe0] ss:$28 sps:$4 sm:$0xff]  }
  0x2d   :  { %v928_v16 = vld [vmem:[#allocation5 + $0xe4] ss:$28 sps:$4 sm:$0xff]   ;;  %v933_v17 = vld [vmem:[#allocation5 + $0xb0] ss:$28 sps:$4 sm:$0xff]   ;;  %v934_v20 = vld [vmem:[#allocation5 + $0x11c] ss:$28 sps:$4 sm:$0xff]  }
  0x2e   :  { %452 = vmatpush1.bf16.msra.mxu0 %v912_v4  ;;  %505 = vmatpush1.bf16.msra.mxu1 %v921_v9  ;;  %v937_v19 = vld [vmem:[#allocation5 + $0xec] ss:$28 sps:$4 sm:$0xff]   ;;  %v936_v22 = vld [vmem:[#allocation5 + $0x118] ss:$28 sps:$4 sm:$0xff]   ;;  %v943_v23 = vld [vmem:[#allocation5 + $0x124] ss:$28 sps:$4 sm:$0xff]  }
  0x2f   :  { %453 = vmatprep.subr.bf16.mxu0 %v916_v7  ;;  %506 = vmatprep.subr.bf16.mxu1 %v925_v12  ;;  %v939_v21 = vld [vmem:[#allocation5 + $0xe8] ss:$28 sps:$4 sm:$0xff]   ;;  %v940_v24 = vld [vmem:[#allocation5 + $0x154] ss:$28 sps:$4 sm:$0xff]   ;;  %v945_v25 = vld [vmem:[#allocation5 + $0x120] ss:$28 sps:$4 sm:$0xff]  }
  0x30   :  { %v942_v26 = vld [vmem:[#allocation5 + $0x150] ss:$28 sps:$4 sm:$0xff]   ;;  %v949_v27 = vld [vmem:[#allocation5 + $0x15c] ss:$28 sps:$4 sm:$0xff]   ;;  %v948_v29 = vld [vmem:[#allocation5 + $0x188] ss:$28 sps:$4 sm:$0xff]  }
  0x31   :  { %v946_v28 = vld [vmem:[#allocation5 + $0x18c] ss:$28 sps:$4 sm:$0xff]   ;;  %v951_v30 = vld [vmem:[#allocation5 + $0x158] ss:$28 sps:$4 sm:$0xff]   ;;  %v965_v40 = vld [vmem:[#allocation5 + $0x84] ss:$28 sps:$4 sm:$0xff]  }
  0x32   :  { %454 = vmatpush1.bf16.msra.mxu0 %v918_v10  ;;  %507 = vmatpush1.bf16.msra.mxu1 %v927_v13  ;;  %v956_v31 = vld [vmem:[#allocation5 + $0x194] ss:$28 sps:$4 sm:$0xff]   ;;  %v961_v37 = vld [vmem:[#allocation5 + $0x4c] ss:$28 sps:$4 sm:$0xff]   ;;  %v978_v41 = vld [vmem:[#allocation2 + $0x8] sm:$0xff]   ;;  %v1128_v60 = vshrl.u32 %v114_v59, 7 }
  0x33   :  { %455 = vmatprep.subr.bf16.mxu0 %v922_v11  ;;  %508 = vmatprep.subr.bf16.mxu1 %v931_v15  ;;  %v955_v32 = vld [vmem:[#allocation5 + $0x14] ss:$28 sps:$4 sm:$0xff]   ;;  %v959_v38 = vld [vmem:[#allocation5 + $0x48] ss:$28 sps:$4 sm:$0xff]   ;;  %v963_v42 = vld [vmem:[#allocation5 + $0x80] ss:$28 sps:$4 sm:$0xff]  }
  0x34   :  { %v958_v34 = vld [vmem:[#allocation5 + $0x190] ss:$28 sps:$4 sm:$0xff]   ;;  %v962_v36 = vld [vmem:[#allocation5 + $0x18] ss:$28 sps:$4 sm:$0xff]   ;;  %v970_v43 = vld [vmem:[#allocation5 + $0x88] ss:$28 sps:$4 sm:$0xff]  }
  0x35   :  { %v953_v35 = vld [vmem:[#allocation5 + $0x10] ss:$28 sps:$4 sm:$0xff]   ;;  %v969_v44 = vld [vmem:[#allocation5 + $0xbc] ss:$28 sps:$4 sm:$0xff]   ;;  %v975_v51 = vld [vmem:[#allocation5 + $0x128] ss:$28 sps:$4 sm:$0xff]  }
  0x36   :  { %456 = vmatpush1.bf16.msra.mxu0 %v924_v14  ;;  %509 = vmatpush1.bf16.msra.mxu1 %v933_v17  ;;  %v966_v39 = vld [vmem:[#allocation5 + $0x50] ss:$28 sps:$4 sm:$0xff]   ;;  %v967_v45 = vld [vmem:[#allocation5 + $0xb8] ss:$28 sps:$4 sm:$0xff]   ;;  %v974_v46 = vld [vmem:[#allocation5 + $0xc0] ss:$28 sps:$4 sm:$0xff]  }
  0x37   :  { %457 = vmatprep.subr.bf16.mxu0 %v928_v16  ;;  %510 = vmatprep.subr.bf16.mxu1 %v937_v19  ;;  %v973_v47 = vld [vmem:[#allocation5 + $0xf4] ss:$28 sps:$4 sm:$0xff]   ;;  %v977_v50 = vld [vmem:[#allocation5 + $0x12c] ss:$28 sps:$4 sm:$0xff]   ;;  %v982_v53 = vld [vmem:[#allocation5 + $0x164] ss:$28 sps:$4 sm:$0xff]  }
  0x38   :  { %v971_v48 = vld [vmem:[#allocation5 + $0xf0] ss:$28 sps:$4 sm:$0xff]   ;;  %v979_v49 = vld [vmem:[#allocation5 + $0xf8] ss:$28 sps:$4 sm:$0xff]   ;;  %v980_v54 = vld [vmem:[#allocation5 + $0x160] ss:$28 sps:$4 sm:$0xff]  }
  0x39   :  { %v983_v52 = vld [vmem:[#allocation5 + $0x130] ss:$28 sps:$4 sm:$0xff]   ;;  %v987_v55 = vld [vmem:[#allocation5 + $0x168] ss:$28 sps:$4 sm:$0xff]   ;;  %v986_v56 = vld [vmem:[#allocation5 + $0x19c] ss:$28 sps:$4 sm:$0xff]  }
  0x3a   :  { %458 = vmatpush1.bf16.msra.mxu0 %v930_v18  ;;  %511 = vmatpush1.bf16.msra.mxu1 %v939_v21  ;;  %v984_v57 = vld [vmem:[#allocation5 + $0x198] ss:$28 sps:$4 sm:$0xff]   ;;  %v988_v58 = vld [vmem:[#allocation5 + $0x1a0] ss:$28 sps:$4 sm:$0xff]   ;;  %v116_v61 = vsub.s32 0, %v1128_v60  ;;  %v120_v63 = vsub.s32 1, %v1128_v60 }
  0x3b   :  { %459 = vmatprep.subr.bf16.mxu0 %v934_v20  ;;  %512 = vmatprep.subr.bf16.mxu1 %v943_v23  ;;  %v112_v62 = vld [vmem:[%s1157_s2] sm:$0xff]  ;;  %v124_v1 = vsub.s32 2, %v1128_v60  ;;  %v128_v3 = vsub.s32 3, %v1128_v60  ;;  %s1068_s2 = smov [#allocation7]  }
  0x3c   :  { %v117_v2 = vrot.slane %v112_v62, %v116_v61  ;;  %v121_v4 = vrot.slane %v112_v62, %v120_v63  ;;  %s766_s13 = sshll.u32 %s1068_s2, 4  ;;  %s767_s13 = int_to_ptr.vmem [resolvable:$true] %s766_s13 }
  0x3d   :  { %v125_v5 = vrot.slane %v112_v62, %v124_v1  ;;  %v129_v8 = vrot.slane %v112_v62, %v128_v3  ;;  %s1033_s14 = scalar_lea.vmem %s767_s13, 1792  ;;  %p1038_p3 = scmp.lt.s32.totalorder %s767_s13, %s767_s13 }
  0x3e   :  { %460 = vmatpush1.bf16.msra.mxu0 %v936_v22  ;;  %513 = vmatpush1.bf16.msra.mxu1 %v945_v25  ;;  %p1034_p2 = scmp.ne.s32.totalorder %s767_s13, %s1033_s14  ;;  %p1039_p4 = scmp.lt.s32.totalorder %s1033_s14, %s1033_s14 }
  0x3f   :  { %461 = vmatprep.subr.bf16.mxu0 %v940_v24  ;;  %514 = vmatprep.subr.bf16.mxu1 %v949_v27 }
  0x40   :  { %p1040_p5 = por %p1039_p4, %p1038_p3 }
  0x42   :  { %462 = vmatpush1.bf16.msra.mxu0 %v942_v26  ;;  %515 = vmatpush1.bf16.msra.mxu1 %v951_v30  ;;  %p1041_p6 = pnand %p1040_p5, %p1034_p2 }
  0x43   :  { %463 = vmatprep.subr.bf16.mxu0 %v946_v28  ;;  %516 = vmatprep.subr.bf16.mxu1 %v956_v31 }
  0x46   :  { %464 = vmatpush1.bf16.msra.mxu0 %v948_v29  ;;  %517 = vmatpush1.bf16.msra.mxu1 %v958_v34 }
  0x47   :  { %555 = vmatprep.subr.bf16.mxu0 %v955_v32  ;;  %879 = vmatprep.subr.bf16.mxu1 %v962_v36 }
  0x49   :  { %482 = vmatmul.mubr.bf16.vlgmr.msra.gmra.mrb[0].mxu0 %v1118_v33  ;;  %535 = vmatmul.mubr.bf16.vlgmr.msra.gmra.mrb[0].mxu1 %v1118_v33 }
  0x4a   :  { %556 = vmatpush1.bf16.msra.mxu0 %v953_v35  ;;  %491 = vmatprep.mubr.bf16.mxu0 %v1067_v0 }
  0x4b   :  { %557 = vmatprep.subr.bf16.mxu0 %v961_v37  ;;  %880 = vmatpush3.bf16.msra.mxu1 %v962_v36 }
  0x4c   :  { %544 = vmatprep.mubr.bf16.mxu1 %v1067_v0  ;;  %881 = vmatprep.subr.bf16.mxu1 %v966_v39 }
  0x4e   :  { %558 = vmatpush1.bf16.msra.mxu0 %v959_v38 }
  0x4f   :  { %559 = vmatprep.subr.bf16.mxu0 %v965_v40  ;;  %882 = vmatpush3.bf16.msra.mxu1 %v966_v39 }
  0x50   :  { %883 = vmatprep.subr.bf16.mxu1 %v970_v43 }
  0x51   :  { %492 = vmatmul.mubr.bf16.gmra.mrb[4].mxu0 %v978_v41  ;;  %545 = vmatmul.mubr.bf16.gmra.mrb[4].mxu1 %v978_v41 }
  0x52   :  { %560 = vmatpush1.bf16.msra.mxu0 %v963_v42  ;;  %587 = vmatprep.mubr.bf16.mxu0 %v1067_v0 }
  0x53   :  { %561 = vmatprep.subr.bf16.mxu0 %v969_v44  ;;  %884 = vmatpush3.bf16.msra.mxu1 %v970_v43 }
  0x54   :  { %895 = vmatprep.mubr.bf16.mxu1 %v1118_v33  ;;  %885 = vmatprep.subr.bf16.mxu1 %v974_v46 }
  0x56   :  { %562 = vmatpush1.bf16.msra.mxu0 %v967_v45 }
  0x57   :  { %563 = vmatprep.subr.bf16.mxu0 %v973_v47  ;;  %886 = vmatpush3.bf16.msra.mxu1 %v974_v46  ;;  %v132_v46 = vsub.s32 4, %v1128_v60  ;;  %v136_v47 = vsub.s32 5, %v1128_v60 }
  0x58   :  { %887 = vmatprep.subr.bf16.mxu1 %v979_v49 }
  0x5a   :  { %564 = vmatpush1.bf16.msra.mxu0 %v971_v48  ;;  %v140_v48 = vsub.s32 6, %v1128_v60 }
  0x5b   :  { %565 = vmatprep.subr.bf16.mxu0 %v977_v50  ;;  %888 = vmatpush3.bf16.msra.mxu1 %v979_v49  ;;  %v133_v49 = vrot.slane %v112_v62, %v132_v46  ;;  %v137_v50 = vrot.slane %v112_v62, %v136_v47 }
  0x5c   :  { %889 = vmatprep.subr.bf16.mxu1 %v983_v52 }
  0x5e   :  { %566 = vmatpush1.bf16.msra.mxu0 %v975_v51 }
  0x5f   :  { %567 = vmatprep.subr.bf16.mxu0 %v982_v53  ;;  %890 = vmatpush3.bf16.msra.mxu1 %v983_v52  ;;  %v141_v52 = vrot.slane %v112_v62, %v140_v48 }
  0x60   :  { %891 = vmatprep.subr.bf16.mxu1 %v987_v55 }
  0x62   :  { %568 = vmatpush1.bf16.msra.mxu0 %v980_v54 }
  0x63   :  { %569 = vmatprep.subr.bf16.mxu0 %v986_v56  ;;  %892 = vmatpush3.bf16.msra.mxu1 %v987_v55 }
  0x64   :  { %893 = vmatprep.subr.bf16.mxu1 %v988_v58 }
  0x66   :  { %570 = vmatpush1.bf16.msra.mxu0 %v984_v57 }
  0x67   :  { %894 = vmatpush3.bf16.msra.mxu1 %v988_v58 }
  0x69   :  { %588 = vmatmul.mubr.bf16.vlgmr.msra.gmra.mrb[8].mxu0 %v1118_v33 }
  0x6a   :  { %597 = vmatprep.mubr.bf16.mxu0 %v1067_v0  ;;  %896 = vmatmul.mubr.bf16.vlgmr.msra.gmra.mrb[8].mxu1 %v978_v41 }
  0x71   :  { %598 = vmatmul.mubr.bf16.gmra.mrb[12].mxu0 %v978_v41 }
 0x11c   :  { %v483_v0 = vpop.f32.mrb[0].mxu0  ;;  %v536_v13 = vpop.f32.mrb[0].mxu1 }
 0x11d   :  { %v484_v6 = vadd.f32 %v483_v0, %v117_v2  ;;  %v485_v7 = vpop.f32.mrb[1].mxu0  ;;  %v537_v16 = vadd.f32 %v536_v13, %v125_v5  ;;  %v538_v17 = vpop.f32.mrb[1].mxu1 }
 0x11e   :  { %v486_v9 = vadd.f32 %v485_v7, %v121_v4  ;;  %v487_v10 = vpop.f32.mrb[2].mxu0  ;;  %v539_v18 = vadd.f32 %v538_v17, %v129_v8  ;;  %v540_v19 = vpop.f32.mrb[2].mxu1 }
 0x11f   :  { %v488_v11 = vadd.f32 %v487_v10, %v117_v2  ;;  %v489_v12 = vpop.f32.mrb[3].mxu0  ;;  %v541_v21 = vadd.f32 %v540_v19, %v125_v5  ;;  %v542_v22 = vpop.f32.mrb[3].mxu1 }
 0x120   :  { %v853_v14 = vpack.c.bf16 %v486_v9, %v484_v6  ;;  %v490_v15 = vadd.f32 %v489_v12, %v121_v4  ;;  %v854_v23 = vpack.c.bf16 %v539_v18, %v537_v16  ;;  %v543_v24 = vadd.f32 %v542_v22, %v129_v8 }
 0x122   :  { %745 = vst [vmem:[#allocation7] sm:$0xff] %v853_v14  ;;  %v857_v20 = vpack.c.bf16 %v490_v15, %v488_v11  ;;  %746 = vst [vmem:[#allocation7 + $0x8] sm:$0xff] %v854_v23  ;;  %v858_v26 = vpack.c.bf16 %v543_v24, %v541_v21 }
 0x124   :  { %749 = vst [vmem:[#allocation7 + $0x1c] sm:$0xff] %v857_v20  ;;  %v493_v25 = vpop.f32.mrb[4].mxu0  ;;  %750 = vst [vmem:[#allocation7 + $0x24] sm:$0xff] %v858_v26  ;;  %v546_v33 = vpop.f32.mrb[4].mxu1 }
 0x125   :  { %v494_v27 = vadd.f32 %v493_v25, %v117_v2  ;;  %v495_v28 = vpop.f32.mrb[5].mxu0  ;;  %v547_v36 = vadd.f32 %v546_v33, %v125_v5  ;;  %v548_v37 = vpop.f32.mrb[5].mxu1 }
 0x126   :  { %v496_v29 = vadd.f32 %v495_v28, %v121_v4  ;;  %v497_v30 = vpop.f32.mrb[6].mxu0  ;;  %v549_v38 = vadd.f32 %v548_v37, %v129_v8  ;;  %v550_v39 = vpop.f32.mrb[6].mxu1 }
 0x127   :  { %v498_v31 = vadd.f32 %v497_v30, %v117_v2  ;;  %v499_v32 = vpop.f32.mrb[7].mxu0  ;;  %v551_v41 = vadd.f32 %v550_v39, %v125_v5  ;;  %v552_v42 = vpop.f32.mrb[7].mxu1 }
 0x128   :  { %v861_v34 = vpack.c.bf16 %v496_v29, %v494_v27  ;;  %v500_v35 = vadd.f32 %v499_v32, %v121_v4  ;;  %v862_v43 = vpack.c.bf16 %v549_v38, %v547_v36  ;;  %v553_v44 = vadd.f32 %v552_v42, %v129_v8 }
 0x12a   :  { %753 = vst [vmem:[#allocation7 + $0x38] sm:$0xff] %v861_v34  ;;  %v865_v40 = vpack.c.bf16 %v500_v35, %v498_v31  ;;  %754 = vst [vmem:[#allocation7 + $0x40] sm:$0xff] %v862_v43  ;;  %v866_v45 = vpack.c.bf16 %v553_v44, %v551_v41 }
 0x12c   :  { %757 = vst [vmem:[#allocation7 + $0x54] sm:$0xff] %v865_v40  ;;  %758 = vst [vmem:[#allocation7 + $0x5c] sm:$0xff] %v866_v45 }
 0x13c   :  { %v589_v51 = vpop.f32.mrb[8].mxu0 }
 0x13d   :  { %v590_v53 = vadd.f32 %v589_v51, %v133_v49  ;;  %v591_v54 = vpop.f32.mrb[9].mxu0  ;;  %v897_v59 = vpop.f32.mrb[8].mxu1 }
 0x13e   :  { %v592_v55 = vadd.f32 %v591_v54, %v137_v50  ;;  %v593_v56 = vpop.f32.mrb[10].mxu0  ;;  %v651_v1 = vadd.f32 %v897_v59, %v141_v52  ;;  %v642_v2 = vpop.f32.mrb[9].mxu1 }
 0x13f   :  { %v594_v57 = vadd.f32 %v593_v56, %v133_v49  ;;  %v595_v58 = vpop.f32.mrb[11].mxu0  ;;  %v643_v3 = vadd.f32 %v642_v2, %v141_v52  ;;  %v898_v4 = vpop.f32.mrb[10].mxu1 }
 0x140   :  { %v855_v61 = vpack.c.bf16 %v592_v55, %v590_v53  ;;  %v596_v63 = vadd.f32 %v595_v58, %v137_v50  ;;  %v864_v60 = vpack.c.bf16 %v651_v1, %v651_v1  ;;  %v654_v5 = vadd.f32 %v898_v4, %v141_v52  ;;  %v645_v6 = vpop.f32.mrb[11].mxu1 }
 0x141   :  { %v856_v7 = vpack.c.bf16 %v643_v3, %v643_v3  ;;  %v646_v62 = vadd.f32 %v645_v6, %v141_v52 }
 0x142   :  { %747 = vst [vmem:[#allocation7 + $0x10] sm:$0xff] %v855_v61  ;;  %v859_v0 = vpack.c.bf16 %v596_v63, %v594_v57  ;;  %756 = vst [vmem:[#allocation7 + $0x50] sm:$0xf] %v864_v60  ;;  %v868_v8 = vpack.c.bf16 %v654_v5, %v654_v5 }
 0x143   :  { %748 = vst [vmem:[#allocation7 + $0x18] sm:$0xf] %v856_v7  ;;  %v860_v11 = vpack.c.bf16 %v646_v62, %v646_v62 }
 0x144   :  { %751 = vst [vmem:[#allocation7 + $0x2c] sm:$0xff] %v859_v0  ;;  %v599_v9 = vpop.f32.mrb[12].mxu0  ;;  %760 = vst [vmem:[#allocation7 + $0x6c] sm:$0xf] %v868_v8 }
 0x145   :  { %v600_v10 = vadd.f32 %v599_v9, %v133_v49  ;;  %v601_v12 = vpop.f32.mrb[13].mxu0  ;;  %752 = vst [vmem:[#allocation7 + $0x34] sm:$0xf] %v860_v11 }
 0x146   :  { %v602_v13 = vadd.f32 %v601_v12, %v137_v50  ;;  %v603_v14 = vpop.f32.mrb[14].mxu0 }
 0x147   :  { %v604_v15 = vadd.f32 %v603_v14, %v133_v49  ;;  %v605_v16 = vpop.f32.mrb[15].mxu0 }
 0x148   :  { %v863_v17 = vpack.c.bf16 %v602_v13, %v600_v10  ;;  %v606_v18 = vadd.f32 %v605_v16, %v137_v50 }
 0x14a   :  { %755 = vst [vmem:[#allocation7 + $0x48] sm:$0xff] %v863_v17  ;;  %v867_v19 = vpack.c.bf16 %v606_v18, %v604_v15 }
 0x14c   :  { %759 = vst [vmem:[#allocation7 + $0x64] sm:$0xff] %v867_v19 }
 0x14d   :  { %1044 = shalt.err (!%p1041_p6)
}
 0x14e   :  { %s1045_s17 = scalar_lea.hbm %s1158_s3, 1792 }
 0x14f   :  { %p1046_p7 = scmp.ne.s32.totalorder %s1158_s3, %s1045_s17  ;;  %p1049_p8 = scmp.lt.u32.totalorder %s1045_s17, %s1158_s3 }
 0x151   :  { %p1051_p9 = pnand %p1049_p8, %p1046_p7 }
 0x153   :  { %1054 = shalt.err (!%p1051_p9)
}
 0x154   :  { %772 = dma.vmem_to_hbm [thread:$0]  %s767_s13, 1792, %s1158_s3, [#allocation4], %s1065_s0, %s1065_s0, %s1066_s9  }
 0x155   :  { %1059 = dma.done.wait [#allocation4], 1792  }
 0x156   :  { %1060 = vsyncadd [#allocation4], 4294965504 }
 0x157   :  { %776 = vsyncpa [#allocation3], 1 }
 0x158   :  { %777 = vsyncpa [#allocation6], 1 }
 0x159   :  { %778 = vsyncpa [#allocation4], 1 }

</bundles_post_ra>
